<compile_context>
chip_gen: v7x
topology: tpu7x:2x2x1
jax: 0.10.0
libtpu: 0.0.40
codegen_flags: <defaults>
</compile_context>

<pallas_src>
import functools

import jax
import jax.numpy as jnp
from jax import lax
from jax.experimental import pallas as pl
from jax.experimental.pallas import tpu as pltpu

NEG_BIG = -1e30  # finite mask sentinel (avoids NaN from -inf on all-masked rows)


def lawformer_head_kernel(enc_ref, mask_ref, cls_ref, w_ref, b_ref,  # inputs
                          predict_ref,                               # output
                          m_sc, l_sc, acc_sc,                        # VMEM scratch
                          *, tile_l):
    # All program_id / num_programs reads stay at the TOP LEVEL of the body
    # (never inside a pl.when branch) -- required for clean lowering.
    l_idx = pl.program_id(1)
    num_l = pl.num_programs(1)

    @pl.when(l_idx == 0)
    def _init():
        m_sc[...] = jnp.full(m_sc.shape, NEG_BIG, m_sc.dtype)
        l_sc[...] = jnp.zeros(l_sc.shape, l_sc.dtype)
        acc_sc[...] = jnp.zeros(acc_sc.shape, acc_sc.dtype)

    rest = enc_ref[0]                                   # [TL, H] bf16
    cls_row = cls_ref[0]                                # [1, H]  bf16
    mask_row = mask_ref[0]                              # [1, TL] f32

    # scores[1, TL] = cls . rest^T  (MXU, contract over H, f32 accumulate)
    scores = lax.dot_general(cls_row, rest,
                             dimension_numbers=(((1,), (1,)), ((), ())),
                             preferred_element_type=jnp.float32)

    # Build keep mask in-kernel: drop padded tokens and global position 0 (CLS).
    pos = l_idx * tile_l + lax.broadcasted_iota(jnp.int32, scores.shape, 1)
    keep = (mask_row > 0.5) & (pos > 0)
    scores = jnp.where(keep, scores, NEG_BIG)

    # --- online softmax update (lane-dense [1, TL]) ---
    m_prev = m_sc[...]                                              # [1, 1]
    m_new = jnp.maximum(m_prev, jnp.max(scores, axis=-1, keepdims=True))
    alpha = jnp.exp(m_prev - m_new)                                 # [1, 1]
    p = jnp.exp(scores - m_new)                                     # [1, TL] f32

    l_sc[...] = alpha * l_sc[...] + jnp.sum(p, axis=-1, keepdims=True)
    # Pooled-feature contribution: p @ rest (MXU, contract over TL).  Keep the
    # big tile in bf16; only the tiny probability row is cast.
    contrib = jnp.dot(p.astype(rest.dtype), rest,
                      preferred_element_type=jnp.float32)           # [1, H]
    acc_sc[...] = alpha * acc_sc[...] + contrib
    m_sc[...] = m_new

    @pl.when(l_idx == num_l - 1)
    def _finalize():
        feature = acc_sc[...] / l_sc[...]                           # [1, H]
        logits = jnp.dot(feature, w_ref[...],
                         preferred_element_type=jnp.float32) + b_ref[...]
        predict_ref[0] = logits                                     # [1, C]


def lawformer_forward(encoded, mask, W, b, labels=None, *, tile_l=512,
                      vmem_limit_bytes=None):
    """Lawformer head: attention pooling over tokens 1.. + linear (+ CE loss)."""
    B, L, H = encoded.shape
    C = W.shape[-1]
    tile_l = min(tile_l, L)
    assert L % tile_l == 0, "L must be divisible by the L tile size"
    num_l = L // tile_l

    enc_bf16 = encoded.astype(jnp.bfloat16)             # single bf16 HBM stream
    cls = enc_bf16[:, 0:1, :]                           # [B, 1, H] lane-dense query
    mask3 = mask.astype(jnp.float32).reshape(B, 1, L)   # [B, 1, L] lane-dense mask

    kernel = functools.partial(lawformer_head_kernel, tile_l=tile_l)

    grid_spec = pltpu.PrefetchScalarGridSpec(
        num_scalar_prefetch=0,
        grid=(B, num_l),
        in_specs=[
            pl.BlockSpec((1, tile_l, H), lambda bi, li: (bi, li, 0)),   # enc
            pl.BlockSpec((1, 1, tile_l), lambda bi, li: (bi, 0, li)),   # mask
            pl.BlockSpec((1, 1, H),      lambda bi, li: (bi, 0, 0)),    # cls
            pl.BlockSpec((H, C),         lambda bi, li: (0, 0)),        # W
            pl.BlockSpec((1, C),         lambda bi, li: (0, 0)),        # b
        ],
        out_specs=pl.BlockSpec((1, 1, C), lambda bi, li: (bi, 0, 0)),
        scratch_shapes=[
            pltpu.VMEM((1, 1), jnp.float32),   # running max
            pltpu.VMEM((1, 1), jnp.float32),   # running sum
            pltpu.VMEM((1, H), jnp.float32),   # running weighted feature
        ],
    )

    # For production shapes (large tile_l, H=768) set vmem_limit_bytes
    # explicitly (e.g. 48-96 MiB depending on TPU generation); the demo shapes
    # are tiny so the default scoped VMEM is plenty.
    compiler_params = pltpu.CompilerParams(
        dimension_semantics=("parallel", "arbitrary"),
        vmem_limit_bytes=vmem_limit_bytes)

    predict = pl.pallas_call(
        kernel,
        out_shape=jax.ShapeDtypeStruct((B, 1, C), jnp.float32),
        grid_spec=grid_spec,
        compiler_params=compiler_params,
    )(enc_bf16, mask3, cls,
      W.astype(jnp.float32), b.reshape(1, -1).astype(jnp.float32))

    predict = predict[:, 0, :]                           # [B, C] logits

    if labels is None:
        return predict, None

    # CrossEntropyLoss (mean reduction) on the tiny [B, C] logits in plain JAX.
    logp = jax.nn.log_softmax(predict, axis=-1)
    loss = -jnp.mean(jnp.take_along_axis(
        logp, labels.astype(jnp.int32)[:, None], axis=-1))
    return predict, loss


def reference_forward(encoded_f32, mask, W, b, labels):
    """Pure-JAX reference matching the PyTorch module semantics."""
    cls = encoded_f32[:, 0, :]
    rest = encoded_f32[:, 1:, :]
    m = mask[:, 1:]
    scores = jnp.einsum('blh,bh->bl', rest, cls)
    scores = jnp.where(m == 0, -jnp.inf, scores)
    p = jax.nn.softmax(scores, axis=-1)
    feature = jnp.sum(rest * p[:, :, None], axis=1)
    logits = feature @ W + b
    logp = jax.nn.log_softmax(logits, axis=-1)
    loss = -jnp.mean(jnp.take_along_axis(logp, labels[:, None], axis=-1))
    return logits, loss


if __name__ == "__main__":
    # Small but hardware-aligned shapes (H, tile_l multiples of 128).
    B, L, H, C, VOCAB = 2, 256, 128, 4, 100
    TILE_L = 128   # 2 L-blocks -> exercises the online-softmax reduction

    key = jax.random.PRNGKey(0)
    k_emb, k_ids, k_w, k_b, k_lab = jax.random.split(key, 5)

    # Deterministic synthetic "encoder": embedding lookup stands in for the
    # pretrained BERT/Lawformer output (encoded_tensor), stored in bf16.
    emb_table = jax.random.normal(k_emb, (VOCAB, H), dtype=jnp.float32) * 0.1
    ids = jax.random.randint(k_ids, (B, L), 0, VOCAB)
    encoded = emb_table[ids].astype(jnp.bfloat16)            # [B, L, H]

    # attention_mask: variable lengths, 1 = real token, 0 = pad.
    lengths = jnp.array([L, 140], dtype=jnp.int32)
    mask = (jnp.arange(L)[None, :] < lengths[:, None]).astype(jnp.float32)

    # Classifier head params (nn.Linear(bert_hidden_size, label_num)).
    W = jax.random.normal(k_w, (H, C), dtype=jnp.float32) * 0.05
    b = jax.random.normal(k_b, (C,), dtype=jnp.float32) * 0.01
    labels = jax.random.randint(k_lab, (B,), 0, C)

    predict, loss = lawformer_forward(encoded, mask, W, b, labels, tile_l=TILE_L)
    jax.block_until_ready((predict, loss))

    ref_predict, ref_loss = reference_forward(encoded.astype(jnp.float32),
                                              mask, W, b, labels)
    # Tolerance loosened slightly: the pooling matmul feeds the probability row
    # to the MXU in bf16 (per perf review) instead of upcasting the big tile.
    assert jnp.allclose(predict, ref_predict, atol=1e-2, rtol=1e-2), (predict, ref_predict)
    assert jnp.allclose(loss, ref_loss, atol=1e-2, rtol=1e-2), (loss, ref_loss)

    print("KERNEL_OK")
</pallas_src>

<mosaic_0001>
module attributes {stable_mosaic.version = 11 : i64} {
  func.func @lawformer_head_kernel(%arg0: i32, %arg1: i32, %arg2: memref<1x128x128xbf16, #tpu.memory_space<vmem>>, %arg3: memref<1x1x128xf32, #tpu.memory_space<vmem>>, %arg4: memref<1x1x128xbf16, #tpu.memory_space<vmem>>, %arg5: memref<128x4xf32, #tpu.memory_space<vmem>>, %arg6: memref<1x4xf32, #tpu.memory_space<vmem>>, %arg7: memref<1x1x4xf32, #tpu.memory_space<vmem>>, %arg8: memref<1x1xf32, #tpu.memory_space<vmem>>, %arg9: memref<1x1xf32, #tpu.memory_space<vmem>>, %arg10: memref<1x128xf32, #tpu.memory_space<vmem>>) attributes {dimension_semantics = [#tpu.dimension_semantics<parallel>, #tpu.dimension_semantics<arbitrary>], iteration_bounds = array<i64: 2, 2>, scalar_prefetch = 0 : i64, scratch_operands = 3 : i64, tpu.core_type = #tpu.core_type<tc>, window_params = [{transform_indices = @transform_0, window_bounds = array<i64: 1, 128, 128>}, {transform_indices = @transform_1, window_bounds = array<i64: 1, 1, 128>}, {transform_indices = @transform_2, window_bounds = array<i64: 1, 1, 128>}, {pipeline_mode = #tpu.pipeline_mode<synchronous>, transform_indices = @transform_3, window_bounds = array<i64: 128, 4>}, {pipeline_mode = #tpu.pipeline_mode<synchronous>, transform_indices = @transform_4, window_bounds = array<i64: 1, 4>}, {transform_indices = @transform_5, window_bounds = array<i64: 1, 1, 4>}]} {
    %c0_i32 = arith.constant 0 : i32
    %0 = arith.cmpi eq, %arg1, %c0_i32 : i32
    %1 = arith.extui %0 : i1 to i32
    %c0_i32_0 = arith.constant 0 : i32
    %2 = arith.cmpi ne, %1, %c0_i32_0 : i32
    scf.if %2 {
      %cst_28 = arith.constant -1.000000e+30 : f32
      %47 = vector.broadcast %cst_28 : f32 to vector<1x1xf32>
      %c0_29 = arith.constant 0 : index
      %c0_30 = arith.constant 0 : index
      %48 = vector.load %arg8[%c0_29, %c0_30] : memref<1x1xf32, #tpu.memory_space<vmem>>, vector<1x1xf32>
      tpu.vector_store %arg8[%c0_29, %c0_30], %47 {strides = array<i32>} : memref<1x1xf32, #tpu.memory_space<vmem>>, vector<1x1xf32>,
      %cst_31 = arith.constant 0.000000e+00 : f32
      %49 = vector.broadcast %cst_31 : f32 to vector<1x1xf32>
      %c0_32 = arith.constant 0 : index
      %c0_33 = arith.constant 0 : index
      %50 = vector.load %arg9[%c0_32, %c0_33] : memref<1x1xf32, #tpu.memory_space<vmem>>, vector<1x1xf32>
      tpu.vector_store %arg9[%c0_32, %c0_33], %49 {strides = array<i32>} : memref<1x1xf32, #tpu.memory_space<vmem>>, vector<1x1xf32>,
      %cst_34 = arith.constant 0.000000e+00 : f32
      %51 = vector.broadcast %cst_34 : f32 to vector<1x128xf32>
      %c0_35 = arith.constant 0 : index
      %c0_36 = arith.constant 0 : index
      %52 = vector.load %arg10[%c0_35, %c0_36] : memref<1x128xf32, #tpu.memory_space<vmem>>, vector<1x128xf32>
      tpu.vector_store %arg10[%c0_35, %c0_36], %51 {strides = array<i32>} : memref<1x128xf32, #tpu.memory_space<vmem>>, vector<1x128xf32>,
    } else {
    }
    %c0 = arith.constant 0 : index
    %c0_1 = arith.constant 0 : index
    %c0_2 = arith.constant 0 : index
    %3 = vector.load %arg2[%c0, %c0_1, %c0_2] : memref<1x128x128xbf16, #tpu.memory_space<vmem>>, vector<1x128x128xbf16>
    %4 = vector.shape_cast %3 : vector<1x128x128xbf16> to vector<128x128xbf16>
    %c0_3 = arith.constant 0 : index
    %c0_4 = arith.constant 0 : index
    %c0_5 = arith.constant 0 : index
    %5 = vector.load %arg4[%c0_3, %c0_4, %c0_5] : memref<1x1x128xbf16, #tpu.memory_space<vmem>>, vector<1x1x128xbf16>
    %6 = vector.shape_cast %5 : vector<1x1x128xbf16> to vector<1x128xbf16>
    %c0_6 = arith.constant 0 : index
    %c0_7 = arith.constant 0 : index
    %c0_8 = arith.constant 0 : index
    %7 = vector.load %arg3[%c0_6, %c0_7, %c0_8] : memref<1x1x128xf32, #tpu.memory_space<vmem>>, vector<1x1x128xf32>
    %8 = vector.shape_cast %7 : vector<1x1x128xf32> to vector<1x128xf32>
    %cst = arith.constant dense<0.000000e+00> : vector<1x128xf32>
    %9 = tpu.matmul %6, %4, %cst {dimension_numbers = #tpu.dot_dimension_numbers<[1], [1], [0], [0], [0, 0, 1, 0], [], []>} : vector<1x128xbf16>, vector<128x128xbf16>, vector<1x128xf32> -> vector<1x128xf32>
    %c128_i32 = arith.constant 128 : i32
    %10 = arith.muli %arg1, %c128_i32 : i32
    %11 = tpu.iota {dimensions = array<i32: 1>} : vector<1x128xi32>
    %12 = vector.broadcast %10 : i32 to vector<1x128xi32>
    %13 = arith.addi %12, %11 : vector<1x128xi32>
    %cst_9 = arith.constant 5.000000e-01 : f32
    %14 = vector.broadcast %cst_9 : f32 to vector<1x128xf32>
    %15 = arith.cmpf ogt, %8, %14 : vector<1x128xf32>
    %c0_i32_10 = arith.constant 0 : i32
    %16 = vector.broadcast %c0_i32_10 : i32 to vector<1x128xi32>
    %17 = arith.cmpi sgt, %13, %16 : vector<1x128xi32>
    %18 = arith.andi %15, %17 : vector<1x128xi1>
    %cst_11 = arith.constant -1.000000e+30 : f32
    %19 = vector.broadcast %cst_11 : f32 to vector<1x128xf32>
    %20 = arith.select %18, %9, %19 : vector<1x128xi1>, vector<1x128xf32>
    %c0_12 = arith.constant 0 : index
    %c0_13 = arith.constant 0 : index
    %21 = vector.load %arg8[%c0_12, %c0_13] : memref<1x1xf32, #tpu.memory_space<vmem>>, vector<1x1xf32>
    %cst_14 = arith.constant dense<0xFF800000> : vector<1xf32>
    %22 = vector.multi_reduction <maximumf>, %20, %cst_14 [1] : vector<1x128xf32> to vector<1xf32>
    %23 = vector.shape_cast %22 : vector<1xf32> to vector<1x1xf32>
    %24 = arith.maximumf %21, %23 : vector<1x1xf32>
    %25 = arith.subf %21, %24 : vector<1x1xf32>
    %26 = math.exp %25 : vector<1x1xf32>
    %27 = vector.broadcast %24 : vector<1x1xf32> to vector<1x128xf32>
    %28 = arith.subf %20, %27 : vector<1x128xf32>
    %29 = math.exp %28 : vector<1x128xf32>
    %c0_15 = arith.constant 0 : index
    %c0_16 = arith.constant 0 : index
    %30 = vector.load %arg9[%c0_15, %c0_16] : memref<1x1xf32, #tpu.memory_space<vmem>>, vector<1x1xf32>
    %31 = arith.mulf %26, %30 : vector<1x1xf32>
    %cst_17 = arith.constant dense<0.000000e+00> : vector<1xf32>
    %32 = vector.multi_reduction <add>, %29, %cst_17 [1] : vector<1x128xf32> to vector<1xf32>
    %33 = vector.shape_cast %32 : vector<1xf32> to vector<1x1xf32>
    %34 = arith.addf %31, %33 : vector<1x1xf32>
    %c0_18 = arith.constant 0 : index
    %c0_19 = arith.constant 0 : index
    %35 = vector.load %arg9[%c0_18, %c0_19] : memref<1x1xf32, #tpu.memory_space<vmem>>, vector<1x1xf32>
    tpu.vector_store %arg9[%c0_18, %c0_19], %34 {strides = array<i32>} : memref<1x1xf32, #tpu.memory_space<vmem>>, vector<1x1xf32>,
    %36 = arith.truncf %29 : vector<1x128xf32> to vector<1x128xbf16>
    %cst_20 = arith.constant dense<0.000000e+00> : vector<1x128xf32>
    %37 = tpu.matmul %36, %4, %cst_20 {dimension_numbers = #tpu.dot_dimension_numbers<[1], [0], [0], [1], [0, 0, 1, 1], [], []>} : vector<1x128xbf16>, vector<128x128xbf16>, vector<1x128xf32> -> vector<1x128xf32>
    %c0_21 = arith.constant 0 : index
    %c0_22 = arith.constant 0 : index
    %38 = vector.load %arg10[%c0_21, %c0_22] : memref<1x128xf32, #tpu.memory_space<vmem>>, vector<1x128xf32>
    %39 = vector.broadcast %26 : vector<1x1xf32> to vector<1x128xf32>
    %40 = arith.mulf %39, %38 : vector<1x128xf32>
    %41 = arith.addf %40, %37 : vector<1x128xf32>
    %c0_23 = arith.constant 0 : index
    %c0_24 = arith.constant 0 : index
    %42 = vector.load %arg10[%c0_23, %c0_24] : memref<1x128xf32, #tpu.memory_space<vmem>>, vector<1x128xf32>
    tpu.vector_store %arg10[%c0_23, %c0_24], %41 {strides = array<i32>} : memref<1x128xf32, #tpu.memory_space<vmem>>, vector<1x128xf32>,
    %c0_25 = arith.constant 0 : index
    %c0_26 = arith.constant 0 : index
    %43 = vector.load %arg8[%c0_25, %c0_26] : memref<1x1xf32, #tpu.memory_space<vmem>>, vector<1x1xf32>
    tpu.vector_store %arg8[%c0_25, %c0_26], %24 {strides = array<i32>} : memref<1x1xf32, #tpu.memory_space<vmem>>, vector<1x1xf32>,
    %c1_i32 = arith.constant 1 : i32
    %44 = arith.cmpi eq, %arg1, %c1_i32 : i32
    %45 = arith.extui %44 : i1 to i32
    %c0_i32_27 = arith.constant 0 : i32
    %46 = arith.cmpi ne, %45, %c0_i32_27 : i32
    scf.if %46 {
      %c0_28 = arith.constant 0 : index
      %c0_29 = arith.constant 0 : index
      %47 = vector.load %arg10[%c0_28, %c0_29] : memref<1x128xf32, #tpu.memory_space<vmem>>, vector<1x128xf32>
      %c0_30 = arith.constant 0 : index
      %c0_31 = arith.constant 0 : index
      %48 = vector.load %arg9[%c0_30, %c0_31] : memref<1x1xf32, #tpu.memory_space<vmem>>, vector<1x1xf32>
      %49 = vector.broadcast %48 : vector<1x1xf32> to vector<1x128xf32>
      %50 = arith.divf %47, %49 : vector<1x128xf32>
      %c0_32 = arith.constant 0 : index
      %c0_33 = arith.constant 0 : index
      %51 = vector.load %arg5[%c0_32, %c0_33] : memref<128x4xf32, #tpu.memory_space<vmem>>, vector<128x4xf32>
      %cst_34 = arith.constant dense<0.000000e+00> : vector<1x4xf32>
      %52 = tpu.matmul %50, %51, %cst_34 {dimension_numbers = #tpu.dot_dimension_numbers<[1], [0], [0], [1], [0, 0, 1, 1], [], []>} : vector<1x128xf32>, vector<128x4xf32>, vector<1x4xf32> -> vector<1x4xf32>
      %c0_35 = arith.constant 0 : index
      %c0_36 = arith.constant 0 : index
      %53 = vector.load %arg6[%c0_35, %c0_36] : memref<1x4xf32, #tpu.memory_space<vmem>>, vector<1x4xf32>
      %54 = arith.addf %52, %53 : vector<1x4xf32>
      %c0_37 = arith.constant 0 : index
      %c0_38 = arith.constant 0 : index
      %c0_39 = arith.constant 0 : index
      %55 = vector.load %arg7[%c0_37, %c0_38, %c0_39] : memref<1x1x4xf32, #tpu.memory_space<vmem>>, vector<1x1x4xf32>
      %56 = vector.shape_cast %55 : vector<1x1x4xf32> to vector<1x4xf32>
      %57 = vector.shape_cast %54 : vector<1x4xf32> to vector<1x1x4xf32>
      tpu.vector_store %arg7[%c0_37, %c0_38, %c0_39], %57 {strides = array<i32>} : memref<1x1x4xf32, #tpu.memory_space<vmem>>, vector<1x1x4xf32>,
    } else {
    }
    return
  }
  func.func @transform_0(%arg0: i32, %arg1: i32) -> (i32, i32, i32) {
    %c0_i32 = arith.constant 0 : i32
    %c0_i32_0 = arith.constant 0 : i32
    return %arg0, %arg1, %c0_i32 : i32, i32, i32
  }
  func.func @transform_1(%arg0: i32, %arg1: i32) -> (i32, i32, i32) {
    %c0_i32 = arith.constant 0 : i32
    %c0_i32_0 = arith.constant 0 : i32
    return %arg0, %c0_i32, %arg1 : i32, i32, i32
  }
  func.func @transform_2(%arg0: i32, %arg1: i32) -> (i32, i32, i32) {
    %c0_i32 = arith.constant 0 : i32
    %c0_i32_0 = arith.constant 0 : i32
    %c0_i32_1 = arith.constant 0 : i32
    return %arg0, %c0_i32, %c0_i32_0 : i32, i32, i32
  }
  func.func @transform_3(%arg0: i32, %arg1: i32) -> (i32, i32) {
    %c0_i32 = arith.constant 0 : i32
    %c0_i32_0 = arith.constant 0 : i32
    %c0_i32_1 = arith.constant 0 : i32
    return %c0_i32, %c0_i32_0 : i32, i32
  }
  func.func @transform_4(%arg0: i32, %arg1: i32) -> (i32, i32) {
    %c0_i32 = arith.constant 0 : i32
    %c0_i32_0 = arith.constant 0 : i32
    %c0_i32_1 = arith.constant 0 : i32
    return %c0_i32, %c0_i32_0 : i32, i32
  }
  func.func @transform_5(%arg0: i32, %arg1: i32) -> (i32, i32, i32) {
    %c0_i32 = arith.constant 0 : i32
    %c0_i32_0 = arith.constant 0 : i32
    %c0_i32_1 = arith.constant 0 : i32
    return %arg0, %c0_i32, %c0_i32_0 : i32, i32, i32
  }
}

</mosaic_0001>

<bundles_post_ra>
// kernel: tpu_custom_call.1
= control target key start
LH: loop header
LB: loop body
LE: loop exit
PB: predicated region body
PF: predicated region fallthrough
CT: control target
= control target key end

     0   :  { %s1537_s0 = inlined_call_operand.hbm [shape: bf16[2,256,128], index: 0, kind: input, shape index: {}]   ;;  %s1538_s1 = inlined_call_operand.vmem [shape: f32[2,1,256], index: 1, kind: input, shape index: {}]   ;;  %s1539_s2 = inlined_call_operand.vmem [shape: bf16[2,1,128], index: 2, kind: input, shape index: {}]   ;;  %s1540_s3 = inlined_call_operand.vmem [shape: f32[128,4], index: 3, kind: input, shape index: {}]   ;;  %s1541_s4 = inlined_call_operand.vmem [shape: f32[1,4], index: 4, kind: input, shape index: {}]   ;;  %s1542_s5 = inlined_call_operand.hbm [shape: f32[2,1,4], index: 5, kind: output, shape index: {}]  }
   0x1   :  { %1548 = sst [smem:[#allocation15_spill]] %s1542_s5 }
   0x2   :  { %10 = vsyncpa [#allocation6], 0 }
   0x3   :  { %12 = vsyncpa [#allocation6 + $0x1], 0 }
   0x4   :  { %13 = vsyncpa [#allocation7], 0 }
   0x5   :  { %15 = vsyncpa [#allocation7 + $0x1], 0  ;;  %s1218_s18 = smov 0   ;;  %s1220_s19 = smov 0  }
   0x6   :  { %s1222_s20 = smov 0   ;;  %s1224_s21 = smov 0  }
   0x7   :  { %s1226_s22 = smov 0   ;;  %s1228_s23 = smov 0  }
   0x8   :  { %s1230_s24 = smov 0   ;;  %s1232_s25 = smov 0  }
   0x9   :  { %s1234_s26 = smov 0   ;;  %s1236_s27 = smov 0  }
   0xa   :  { %s1238_s28 = smov 0  }
   0xb LB: > { %1549 = sst [smem:[#allocation11_spill]] %s1153_s23  ;;  %s732_s29 = sadd.s32 4294967295, %s1173_s28   ;;  %s1173_s28 = sphi %s1238_s28, %s21_s28   ;;  %s1169_s27 = sphi %s1236_s27, %s1573_s27   ;;  %s1165_s26 = sphi %s1234_s26, %s1572_s26   ;;  %s1161_s25 = sphi %s1232_s25, %s1571_s25   ;;  %s1157_s24 = sphi %s1230_s24, %s1570_s24   ;;  %s1153_s23 = sphi %s1228_s23, %s1562_s23   ;;  %s1149_s22 = sphi %s1226_s22, %s1569_s22   ;;  %s1145_s21 = sphi %s1224_s21, %s1568_s21   ;;  %s1141_s20 = sphi %s1222_s20, %s1567_s20   ;;  %s1137_s19 = sphi %s1220_s19, %s1566_s19   ;;  %s1133_s18 = sphi %s1218_s18, %s1565_s18  }
   0xc   : > { %s733_s30 = sadd.s32 4294967294, %s1173_s28   ;;  %s30_s6 = sadd.s32 1, %s1165_s26 }
   0xd   : > { %s33_s7 = sadd.s32 1, %s1169_s27  ;;  %p31_p0 = scmp.ge.s32.totalorder %s30_s6, 2 }
   0xe   : > { %s42_s8 = sadd.s32 1, %s1153_s23  ;;  %p49_p1 = scmp.ne.s32.totalorder %s1153_s23, %s1149_s22 }
   0xf   : > { %p50_p2 = scmp.eq.s32.totalorder %s1173_s28, 0  ;;  %s1575_s6 = smov (%p31_p0, %s30_s6), 0 }
  0x10   : > { %1550 = sst [smem:[#allocation12_spill]] %s1575_s6  ;;  %s1577_s7 = smov (!%p31_p0, %s33_s7), %s1169_s27 }
  0x11   : > { %s38_s9 = ssub.s32 %s1165_s26, %s1575_s6  ;;  %p1284_p3 = por %p50_p2, %p49_p1 }
  0x12   : > { %p35_p4 = scmp.ge.s32.totalorder %s1577_s7, 2  ;;  %p55_p5 = scmp.ne.s32.totalorder %s1149_s22, %s1145_s21 }
  0x13   : > { %p56_p6 = scmp.eq.s32.totalorder %s732_s29, 0  ;;  %s164_s11 = sadd.s32 1, %s1141_s20 }
  0x14   : > { %s1579_s7 = smov (%p35_p4, %s1577_s7), 0  ;;  %p174_p8 = scmp.ne.s32.totalorder %s1141_s20, %s1137_s19 }
  0x15   : > { %1552 = sst [smem:[#allocation13_spill]] %s1579_s7  ;;  %p1292_p7 = por %p56_p6, %p55_p5 }
  0x16   : > { %s37_s13 = ssub.s32 %s1169_s27, %s1579_s7  ;;  %p175_p9 = scmp.eq.s32.totalorder %s732_s29, 3 }
  0x17   : > { %s39_s14 = sor.u32 %s38_s9, %s37_s13  ;;  %p162_p10 = scmp.eq.s32.totalorder %s37_s13, 0 }
  0x18   : > { %p40_p11 = scmp.eq.s32.totalorder %s39_s14, 0  ;;  %p1300_p12 = por %p175_p9, %p174_p8 }
  0x19   : > { %s1305_s16 = scalar_select %p162_p10, %s1141_s20, %s164_s11  }
  0x1a   : > { %s1554_s15 = scalar_select %p1300_p12, 1, 0 }
  0x1b   : > { %s1308_s17 = scalar_select %p40_p11, %s1153_s23, %s42_s8  }
  0x1c   : > { %p180_p13 = scmp.ne.s32.totalorder %s1137_s19, %s1133_s18  ;;  %p181_p0 = scmp.eq.s32.totalorder %s733_s30, 3 }
  0x1d   : > { %1555 = sst [smem:[#allocation14_spill]] %s1308_s17  ;;  %p903_p1 = scmp.lt.s32.totalorder %s1173_s28, 4 }
  0x1e   : > { %p1313_p2 = por %p181_p0, %p180_p13  ;;  %s207_s29 = sand.u32 1, %s1153_s23  }
  0x1f   : > { %s736_s9 = sshll.u32 %s207_s29, 6  ;;  %s737_s13 = sshll.u32 %s1165_s26, 4 }
  0x20   : > { %s1556_s21 = scalar_select %p1313_p2, 1, 0 }
  0x21   : > { %s738_s14 = sshll.u32 %s1169_s27, 5  ;;  %s211_s7 = scalar_lea.vmem [#allocation5], %s736_s9 }
  0x22   : > { %s220_s6 = sshll.u32 %s211_s7, 4  ;;  %s217_s5 = sadd.s32 %s738_s14, %s737_s13  ;;  %s1320_s6 = int_to_ptr.vmem [resolvable:$true] %s220_s6 }
  0x23   : > { %s739_s11 = sshll.u32 %s217_s5, 6  ;;  %p1324_p4 = pnand %p903_p1, %p1284_p3 }
  0x24   : > { %s1331_s23 = scalar_lea.hbm %s1537_s0, %s739_s11  ;;  %s1333_s7 = scalar_lea.sflag [#allocation6], %s207_s29 }
  0x25   : > { %s1021_s9 = scalar_lea.hbm %s1331_s23, 1024  ;;  %p1023_p3 = pneg %p1324_p4 }
  0x26   : > { %p1022_p5 = scmp.ne.s32.totalorder %s1331_s23, %s1021_s9  ;;  %s1026_s17 = scalar_lea.hbm %s1537_s0, 4096 }
  0x27   : > { %p1027_p9 = scmp.lt.u32.totalorder %s1331_s23, %s1537_s0  ;;  %p1028_p10 = scmp.lt.u32.totalorder %s1026_s17, %s1021_s9 }
  0x28   : > { %p1024_p6 = pnand %p1023_p3, %p1022_p5  ;;  %p1030_p13 = scmp.lt.u32.totalorder %s1021_s9, %s1331_s23 }
  0x29   : > { %p1029_p11 = por %p1028_p10, %p1027_p9 }
  0x2a   : > { %p1025_p8 = pneg %p1024_p6 }
  0x2b   : > { %p1031_p0 = por %p1030_p13, %p1029_p11 }
  0x2d   : > { %p1032_p1 = pnand %p1031_p0, %p1025_p8 }
  0x2f   : > { %1035 = shalt.err (!%p1032_p1)
}
  0x30   : > { %s1036_s29 = scalar_lea.vmem %s1320_s6, 1024  ;;  %s1175_s11 = smov [#allocation5]  }
  0x31   : > { %p1037_p5 = scmp.ne.s32.totalorder %s1320_s6, %s1036_s29  ;;  %s1041_s30 = sshll.u32 %s1175_s11, 4  ;;  %s1042_s30 = int_to_ptr.vmem [resolvable:$false] %s1041_s30 }
  0x32   : > { %s1043_s5 = scalar_lea.vmem %s1042_s30, 2048  ;;  %p1044_p12 = scmp.lt.s32.totalorder %s1320_s6, %s1042_s30 }
  0x33   : > { %p1039_p6 = pnand %p1037_p5, %p1023_p3  ;;  %p1045_p9 = scmp.lt.s32.totalorder %s1043_s5, %s1036_s29 }
  0x35   : > { %p1040_p2 = pneg %p1039_p6  ;;  %p1046_p10 = por %p1045_p9, %p1044_p12 }
  0x37   : > { %p1047_p11 = pnand %p1046_p10, %p1040_p2 }
  0x39   : > { %1050 = shalt.err (!%p1047_p11)
}
  0x3a   : > { %s1176_s9 = smov 64   ;;  %s1177_s10 = smov 4  }
  0x3b   : > { %898 = dma.hbm_to_vmem [thread:$0]  (!%p1324_p4), %s1331_s23, 1024, %s1320_s6, %s1333_s7, %s1176_s9, %s1176_s9, %s1177_s10  }
  0x3c   : > { %p740_p3 = scmp.ge.s32.totalorder %s1173_s28, 1  ;;  %p244_p8 = scmp.lt.s32.totalorder %s1173_s28, 5 }
  0x3e   : > { %p245_p13 = pnand %p740_p3, %p244_p8 }
  0x3f   : > { %s250_s17 = sand.u32 (!%p245_p13), 1, %s1149_s22  }
  0x40   : > { %248 = sbr.rel (%p245_p13) target bundleno = 1191 (0x4a7), region = 40  ;;  %s741_s13 = sshll.u32 (!%p245_p13), %s250_s17, 6 }
  0x41   : > { %s251_s14 = scalar_lea.sflag (!%p245_p13), [#allocation6], %s250_s17  ;;  %s1364_s29 = scalar_lea.vmem (!%p245_p13), [#allocation5], %s741_s13 }
  0x47   : > { %1124 = dma.done.wait (%p1292_p7), %s251_s14, 1024  }
  0x48   : > { %1126 = vsyncadd (%p1292_p7), %s251_s14, 4294966272  ;;  %s288_s23 = sand.u32 1, %s1137_s19   ;;  %p291_p12 = scmp.lt.s32.totalorder %s1161_s25, 1 }
  0x49   : > { %p293_p2 = scmp.lt.s32.totalorder %s1157_s24, 1  ;;  %s1390_s13 = scalar_lea.vmem [#allocation8], %s288_s23 }
  0x4a   : > { %s1374_s6 = scalar_select %p291_p12, %s1161_s25, 1 }
  0x4b   : > { %s294_s8 = scalar_select %p293_p2, %s1157_s24, 1 }
  0x4c   : > { %s742_s7 = sshll.u32 %s1374_s6, 1  ;;  %s300_s12 = scalar_lea.vmem %s1539_s2, %s1374_s6 }
  0x4d   : > { %s1382_s5 = sadd.s32 %s742_s7, %s294_s8  ;;  %p743_p7 = scmp.ne.s32.totalorder %s1157_s24, 0 }
  0x4e   : > { %s297_s17 = scalar_lea.vmem %s1538_s1, %s1382_s5  ;;  %vm306_vm0 = vcmask (!%p743_p7), 0   ;;  %v1178_v0 = vmov (!%p743_p7), -1e+30   ;;  %v1179_v1 = vmov (!%p743_p7), 0.0  }
  0x4f   : > { %305 = sbr.rel (%p743_p7) target bundleno = 86 (0x56), region = 48  ;;  %307 = vst.msk [vmem:[#allocation2] sm:$0x1] (!%p743_p7), %vm306_vm0, %v1178_v0  ;;  %308 = vst.msk [vmem:[#allocation3] sm:$0x1] (!%p743_p7), %vm306_vm0, %v1179_v1 }
  0x50   : > { %309 = vst [vmem:[#allocation4] sm:$0x1] (!%p743_p7), %v1179_v1 }
  0x56 PF: > { %v1006_v2 = vld [vmem:[%s1364_s29] sm:$0xff]   ;;  %v1180_v3 = vmov 0.0   ;;  %vm1181_vm1 = vmmov 0   ;;  %v1007_v4 = vld [vmem:[%s1364_s29 + $0x8] sm:$0xff]   ;;  %v1008_v5 = vld [vmem:[%s1364_s29 + $0x10] sm:$0xff]   ;;  %v417_v12 = vlaneseq  ;;  %s752_s7 = sshll.u32 %s1157_s24, 7 }
  0x57   : > { %792 = vmatprep.subr.bf16.mxu0 %v1180_v3  ;;  %812 = vmatprep.subr.bf16.mxu1 %v1180_v3  ;;  %v1009_v6 = vld [vmem:[%s1364_s29 + $0x18] sm:$0xff]   ;;  %v1010_v7 = vld [vmem:[%s1364_s29 + $0x20] sm:$0xff]   ;;  %v1011_v8 = vld [vmem:[%s1364_s29 + $0x28] sm:$0xff]   ;;  %v419_v14 = vstv %s752_s7  ;;  %vm426_vm5 = vcmask 1040384   ;;  %v1182_v23 = vmov 0   ;;  %vm452_vm6 = vcmask 0  }
  0x58   : > { %793 = vmatpush3.bf16.xpose.msra.mxu0 %v1006_v2  ;;  %808 = vmatprep.mubr.msk.bf16.mxu0 %vm1181_vm1, %v1180_v3  ;;  %v1012_v9 = vld [vmem:[%s1364_s29 + $0x30] sm:$0xff]   ;;  %v1013_v10 = vld [vmem:[%s1364_s29 + $0x38] sm:$0xff]   ;;  %v418_v13 = vand.u32 127, %v417_v12  ;;  %v440_v28 = vshrl.u32 %v417_v12, 7  ;;  %p753_p4 = scmp.ne.s32.totalorder %s1157_s24, 1 }
  0x59   : > { %794 = vmatprep.subr.bf16.mxu0 %v1180_v3  ;;  %813 = vmatpush3.bf16.msra.mxu1 %v1006_v2  ;;  %v326_v11 = vld [vmem:[%s300_s12] sm:$0x1]  ;;  %v446_v39 = vld [vmem:[#allocation3] sm:$0x1]  ;;  %v495_v45 = vld [vmem:[#allocation4] sm:$0x1] }
  0x5a   : > { %814 = vmatprep.subr.bf16.mxu1 %v1180_v3  ;;  %828 = vmatprep.mubr.msk.bf16.mxu1 %vm1181_vm1, %v1180_v3  ;;  %v420_v15 = vadd.s32 %v419_v14, %v418_v13  ;;  %v327_v16 = vld [vmem:[%s297_s17] sm:$0x1]  ;;  %v1414_v29 = vsub.s32 0, %v440_v28  ;;  %v527_v54 = vld [vmem:[%s1540_s3 + $0x8] sm:$0xff] (!%p753_p4)  ;;  %v1183_v55 = vmov (!%p753_p4), 0   ;;  %v1184_v56 = vmov (!%p753_p4), 0.0|0.0  }
  0x5b   : > { %vm421_vm2 = vcmp.gt.f32.partialorder %v327_v16, 0.5  ;;  %1004 = vset.pattern.permute.xlu0 %v1182_v23  ;;  %1005 = vset.pattern.permute.xlu1 %v1182_v23  ;;  %v425_v24 = vld [vmem:[#allocation2] sm:$0x1]  ;;  %v528_v58 = vld [vmem:[%s1540_s3 + $0x10] sm:$0xff] (!%p753_p4)  ;;  %v529_v59 = vld [vmem:[%s1540_s3 + $0x18] sm:$0xff] (!%p753_p4)  ;;  %vm1185_vm7 = vmmov (!%p753_p4), 0  }
  0x5c   : > { %vm422_vm3 = vcmp.gt.s32.totalorder %v420_v15, 0  ;;  %v526_v53 = vld [vmem:[%s1540_s3] sm:$0xff] (!%p753_p4)  ;;  %v871_v60 = vpack.c.bf16 (!%p753_p4), %v529_v59, %v528_v58  ;;  %v531_v62 = vld [vmem:[%s1540_s3 + $0x28] sm:$0xff] (!%p753_p4)  ;;  %v1186_v63 = vmov (!%p753_p4), 0.0   ;;  %v532_v1 = vld [vmem:[%s1540_s3 + $0x30] sm:$0xff] (!%p753_p4)  ;;  %vm613_vm8 = vcmask (!%p753_p4), 24576  }
  0x5d   : > { %815 = vmatpush3.bf16.msra.mxu1 %v1007_v4  ;;  %vm423_vm4 = vmand %vm421_vm2, %vm422_vm3  ;;  %v868_v57 = vpack.c.bf16 (!%p753_p4), %v527_v54, %v526_v53  ;;  %v530_v61 = vld [vmem:[%s1540_s3 + $0x20] sm:$0xff] (!%p753_p4)  ;;  %v533_v2 = vld [vmem:[%s1540_s3 + $0x38] sm:$0xff] (!%p753_p4) }
  0x5e   : > { %816 = vmatprep.subr.bf16.mxu1 %v1180_v3  ;;  %v874_v0 = vpack.c.bf16 (!%p753_p4), %v531_v62, %v530_v61  ;;  %v540_v13 = vld [vmem:[%s1540_s3 + $0x70] sm:$0xff] (!%p753_p4)  ;;  %v541_v14 = vld [vmem:[%s1540_s3 + $0x78] sm:$0xff] (!%p753_p4) }
  0x5f   : > { %v889_v15 = vpack.c.bf16 (!%p753_p4), %v541_v14, %v540_v13 }
  0x60   : > { %795 = vmatpush3.bf16.xpose.msra.mxu0 %v1007_v4  ;;  %v534_v4 = vld [vmem:[%s1540_s3 + $0x40] sm:$0xff] (!%p753_p4) }
  0x61   : > { %796 = vmatprep.subr.bf16.mxu0 %v1180_v3  ;;  %817 = vmatpush3.bf16.msra.mxu1 %v1008_v5 }
  0x62   : > { %818 = vmatprep.subr.bf16.mxu1 %v1180_v3 }
  0x65   : > { %819 = vmatpush3.bf16.msra.mxu1 %v1009_v6 }
  0x66   : > { %820 = vmatprep.subr.bf16.mxu1 %v1180_v3 }
  0x68   : > { %797 = vmatpush3.bf16.xpose.msra.mxu0 %v1008_v5  ;;  %v535_v5 = vld [vmem:[%s1540_s3 + $0x48] sm:$0xff] (!%p753_p4) }
  0x69   : > { %798 = vmatprep.subr.bf16.mxu0 %v1180_v3  ;;  %821 = vmatpush3.bf16.msra.mxu1 %v1010_v7 }
  0x6a   : > { %822 = vmatprep.subr.bf16.mxu1 %v1180_v3 }
  0x6d   : > { %823 = vmatpush3.bf16.msra.mxu1 %v1011_v8 }
  0x6e   : > { %824 = vmatprep.subr.bf16.mxu1 %v1180_v3 }
  0x70   : > { %799 = vmatpush3.bf16.xpose.msra.mxu0 %v1009_v6  ;;  %v880_v6 = vpack.c.bf16 (!%p753_p4), %v535_v5, %v534_v4 }
  0x71   : > { %800 = vmatprep.subr.bf16.mxu0 %v1180_v3  ;;  %825 = vmatpush3.bf16.msra.mxu1 %v1012_v9 }
  0x72   : > { %826 = vmatprep.subr.bf16.mxu1 %v1180_v3 }
  0x75   : > { %827 = vmatpush3.bf16.msra.mxu1 %v1013_v10 }
  0x78   : > { %801 = vmatpush3.bf16.xpose.msra.mxu0 %v1010_v7  ;;  %v536_v7 = vld [vmem:[%s1540_s3 + $0x50] sm:$0xff] (!%p753_p4) }
  0x79   : > { %802 = vmatprep.subr.bf16.mxu0 %v1180_v3 }
  0x80   : > { %803 = vmatpush3.bf16.xpose.msra.mxu0 %v1011_v8  ;;  %v537_v8 = vld [vmem:[%s1540_s3 + $0x58] sm:$0xff] (!%p753_p4) }
  0x81   : > { %804 = vmatprep.subr.bf16.mxu0 %v1180_v3 }
  0x88   : > { %805 = vmatpush3.bf16.xpose.msra.mxu0 %v1012_v9  ;;  %v883_v9 = vpack.c.bf16 (!%p753_p4), %v537_v8, %v536_v7 }
  0x89   : > { %806 = vmatprep.subr.bf16.mxu0 %v1180_v3  ;;  %v877_v3 = vpack.c.bf16 (!%p753_p4), %v533_v2, %v532_v1 }
  0x90   : > { %807 = vmatpush3.bf16.xpose.msra.mxu0 %v1013_v10  ;;  %v538_v10 = vld [vmem:[%s1540_s3 + $0x60] sm:$0xff] (!%p753_p4) }
  0x91   : > { %867 = vmatprep.subr.bf16.mxu0 (!%p753_p4), %v1184_v56 }
  0x97   : > { %809 = vmatmul.mubr.bf16.vlgmr.msra.gmra.mrb[0].mxu0 %v326_v11  ;;  %v539_v11 = vld [vmem:[%s1540_s3 + $0x68] sm:$0xff] (!%p753_p4) }
  0x98   : > { %869 = vmatpush3.bf16.msra.mxu0 (!%p753_p4), %v868_v57  ;;  %864 = vmatprep.mubr.msk.f32.mxu0 (!%p753_p4), %vm1185_vm7, %v1186_v63  ;;  %v886_v12 = vpack.c.bf16 (!%p753_p4), %v539_v11, %v538_v10 }
  0x99   : > { %870 = vmatprep.subr.bf16.mxu0 (!%p753_p4), %v1184_v56 }
  0x9c   : > { %872 = vmatpush3.bf16.msra.mxu0 (!%p753_p4), %v871_v60 }
  0x9d   : > { %873 = vmatprep.subr.bf16.mxu0 (!%p753_p4), %v1184_v56 }
  0xa0   : > { %875 = vmatpush3.bf16.msra.mxu0 (!%p753_p4), %v874_v0 }
  0xa1   : > { %876 = vmatprep.subr.bf16.mxu0 (!%p753_p4), %v1184_v56 }
  0xa4   : > { %878 = vmatpush3.bf16.msra.mxu0 (!%p753_p4), %v877_v3 }
  0xa5   : > { %879 = vmatprep.subr.bf16.mxu0 (!%p753_p4), %v1184_v56 }
  0xa8   : > { %881 = vmatpush3.bf16.msra.mxu0 (!%p753_p4), %v880_v6 }
  0xa9   : > { %882 = vmatprep.subr.bf16.mxu0 (!%p753_p4), %v1184_v56 }
  0xac   : > { %884 = vmatpush3.bf16.msra.mxu0 (!%p753_p4), %v883_v9 }
  0xad   : > { %885 = vmatprep.subr.bf16.mxu0 (!%p753_p4), %v1184_v56 }
  0xb0   : > { %887 = vmatpush3.bf16.msra.mxu0 (!%p753_p4), %v886_v12 }
  0xb1   : > { %888 = vmatprep.subr.bf16.mxu0 (!%p753_p4), %v1184_v56 }
  0xb4   : > { %890 = vmatpush3.bf16.msra.mxu0 (!%p753_p4), %v889_v15 }
 0x16a   : > { %v410_v17 = vpop.f32.mrb[0].mxu0 }
 0x16b   : > { %v424_v18 = vsel %vm423_vm4, %v410_v17, -1e+30  ;;  %v810_v19 = vpop.f32.mrb[1].mxu0 }
 0x16c   : > { %v413_v20 = vpop.f32.mrb[2].mxu0  ;;  %v427_v21 = vsel %vm426_vm5, %v424_v18, -inf }
 0x16d   : > { %428 = vmax.xlane.f32.xlu0 %v427_v21  ;;  %v811_v22 = vpop.f32.mrb[3].mxu0  ;;  %v542_v21 = vld [vmem:[%s1541_s4] sm:$0x1] (!%p753_p4) }
 0x1fa   : > { %v429_v25 = vpop.xlane.xlu0 %428 }
 0x1fb   : > { %v430_v26 = vmax.f32 %v425_v24, %v429_v25 }
 0x1fd   : > { %v431_v27 = vsub.f32 %v425_v24, %v430_v26  ;;  %508 = vst.msk [vmem:[#allocation2] sm:$0x1] %vm452_vm6, %v430_v26  ;;  %436 = vperm.xlu0 %1004, %v430_v26  }
 0x1ff   : > { %v432_v37 = vmul.f32 1.442695, %v431_v27 }
 0x201   : > { %1018 = vset.pattern.permute.xlu0 (!%p753_p4), %v1183_v55 }
 0x27c   : > { %v437_v30 = vpop.permute.xlu0 %436 }
 0x27d   : > { %v442_v31 = vrot.slane %v437_v30, %v1414_v29 }
 0x27f   : > { %v443_v32 = vsub.f32 %v424_v18, %v442_v31 }
 0x281   : > { %v444_v33 = vmul.f32 1.442695, %v443_v32 }
 0x283   : > { %1014 = vpow2.f32 %v444_v33 }
 0x284   : > { %1016 = vpow2.f32 %v432_v37 }
 0x28d   : > { %v1015_v34 = vpop.eup %1014 }
 0x28e   : > { %v448_v35 = vsel %vm426_vm5, %v1015_v34, 0.0  ;;  %v454_v36 = vpack.c.bf16 %v1015_v34, %v1015_v34  ;;  %v1017_v38 = vpop.eup %1016 }
 0x28f   : > { %449 = vadd.xlane.f32.xlu1 %v448_v35  ;;  %v447_v40 = vmul.f32 %v1017_v38, %v446_v39 }
 0x290   : > { %829 = vmatmul.mubr.bf16.vlgmr.msra.gmra.mrb[0].mxu1 %v454_v36 }
 0x2a0   : > { %498 = vperm.xlu1 %1005, %v1017_v38  }
 0x31c   : > { %v450_v41 = vpop.xlane.xlu1 %449 }
 0x31d   : > { %v451_v42 = vadd.f32 %v450_v41, %v447_v40 }
 0x31f   : > { %453 = vst.msk [vmem:[#allocation3] sm:$0x1] %vm452_vm6, %v451_v42 }
 0x320   : > { %v499_v43 = vpop.permute.xlu1 %498 }
 0x321   : > { %v504_v44 = vrot.slane %v499_v43, %v1414_v29 }
 0x323   : > { %v505_v46 = vmul.f32 %v504_v44, %v495_v45 }
 0x326   : > { %v514_v52 = vld [vmem:[#allocation3] sm:$0x1] (!%p753_p4) }
 0x327   : > { %517 = vperm.xlu0 (!%p753_p4), %1018, %v514_v52  }
 0x360   : > { %512 = sbr.rel (%p753_p4) target bundleno = 1165 (0x48d), region = 52 }
 0x363   : > { %v489_v47 = vpop.f32.mrb[0].mxu1 }
 0x364   : > { %v506_v48 = vadd.f32 %v505_v46, %v489_v47  ;;  %v830_v49 = vpop.f32.mrb[1].mxu1 }
 0x365   : > { %v492_v50 = vpop.f32.mrb[2].mxu1 }
 0x366   : > { %507 = vst [vmem:[#allocation4] sm:$0x1] %v506_v48  ;;  %v831_v51 = vpop.f32.mrb[3].mxu1 }
 0x36d   : > { %v513_v18 = vld [vmem:[#allocation4] sm:$0x1] }
 0x3a6   : > { %v518_v16 = vpop.permute.xlu0 %517 }
 0x3a7   : > { %v523_v17 = vrot.slane %v518_v16, %v1414_v29 }
 0x3a9   : > { %1019 = vrcp.f32 %v523_v17 }
 0x3b3   : > { %v1020_v19 = vpop.eup %1019 }
 0x3b4   : > { %v525_v20 = vmul.f32 %v1020_v19, %v513_v18 }
 0x3b6   : > { %865 = vmatmul.mubr.f32.vlgmr.msra.gmra.mrb[0].mxu0 %v525_v20 }
 0x489   : > { %v609_v22 = vpop.f32.mrb[0].mxu0 }
 0x48a   : > { %v610_v23 = vadd.f32 %v609_v22, %v542_v21  ;;  %v866_v24 = vpop.f32.mrb[1].mxu0 }
 0x48c   : > { %614 = vst.msk [vmem:[%s1390_s13] sm:$0x1] %vm613_vm8, %v610_v23 }
 0x48d PF: > { %s754_s14 = sshll.u32 %s1161_s25, 4  ;;  %s1558_s29 = sld [smem:[#allocation15_spill]] }
 0x48e   : > { %s628_s6 = sshll.u32 %s1390_s13, 4  ;;  %s616_s30 = scalar_lea.sflag [#allocation7], %s288_s23  ;;  %s629_s6 = int_to_ptr.vmem [resolvable:$true] %s628_s6 }
 0x48f   : > { %s1051_s12 = scalar_lea.vmem %s629_s6, 16  ;;  %p1559_p1 = scmp.ne.s32.totalorder %s1554_s15, 0 }
 0x490   : > { %p1052_p0 = scmp.ne.s32.totalorder %s629_s6, %s1051_s12  ;;  %s1187_s5 = smov [#allocation8]  }
 0x491   : > { %s1055_s9 = sshll.u32 %s1187_s5, 4  ;;  %s1056_s9 = int_to_ptr.vmem [resolvable:$false] %s1055_s9 }
 0x492   : > { %p1053_p5 = pnand %p1052_p0, %p1559_p1  ;;  %s1057_s10 = scalar_lea.vmem %s1056_s9, 32 }
 0x493   : > { %s1478_s11 = scalar_lea.hbm %s1558_s29, %s754_s14  ;;  %p1058_p9 = scmp.lt.s32.totalorder %s629_s6, %s1056_s9 }
 0x494   : > { %p1054_p6 = pneg %p1053_p5  ;;  %p1059_p10 = scmp.lt.s32.totalorder %s1057_s10, %s1051_s12 }
 0x496   : > { %p1060_p11 = por %p1059_p10, %p1058_p9 }
 0x498   : > { %p1061_p3 = pnand %p1060_p11, %p1054_p6 }
 0x49a   : > { %1064 = shalt.err (!%p1061_p3)
}
 0x49b   : > { %s1065_s25 = scalar_lea.hbm %s1478_s11, 16  ;;  %s1069_s24 = scalar_lea.hbm %s1558_s29, 32 }
 0x49c   : > { %p1066_p8 = scmp.ne.s32.totalorder %s1478_s11, %s1065_s25  ;;  %p1070_p2 = scmp.lt.u32.totalorder %s1478_s11, %s1558_s29 }
 0x49d   : > { %p1071_p7 = scmp.lt.u32.totalorder %s1069_s24, %s1065_s25  ;;  %p1073_p0 = scmp.lt.u32.totalorder %s1065_s25, %s1478_s11 }
 0x49e   : > { %p1067_p13 = pnand %p1066_p8, %p1559_p1 }
 0x49f   : > { %p1072_p4 = por %p1071_p7, %p1070_p2 }
 0x4a0   : > { %p1068_p12 = pneg %p1067_p13 }
 0x4a1   : > { %p1074_p5 = por %p1073_p0, %p1072_p4 }
 0x4a3   : > { %p1075_p6 = pnand %p1074_p5, %p1068_p12 }
 0x4a5   : > { %1078 = shalt.err (!%p1075_p6)
}
 0x4a6   : > { %893 = dma.vmem_to_hbm [thread:$0]  (%p1559_p1), %s629_s6, 16, %s1478_s11, %s616_s30  }
 0x4a7 PF: > { %p904_p9 = scmp.ge.s32.totalorder %s1173_s28, 2  ;;  %s640_s8 = sand.u32 1, %s1133_s18  }
 0x4a8   : > { %p1560_p10 = scmp.ne.s32.totalorder %s1556_s21, 0  ;;  %s641_s7 = scalar_lea.sflag [#allocation7], %s640_s8 }
 0x4aa   : > { %p900_p11 = pnand %p904_p9, %p1560_p10 }
 0x4ac   : > { %1128 = dma.done.wait (!%p900_p11), %s641_s7, 16  }
 0x4ad   : > { %1130 = vsyncadd (!%p900_p11), %s641_s7, 4294967280  ;;  %s21_s28 = sadd.s32 1, %s1173_s28   ;;  %s1561_s15 = sld [smem:[#allocation11_spill]] }
 0x4ae   : > { %p18_p3 = scmp.ge.s32.totalorder %s21_s28, 6   ;;  %s1562_s23 = sld [smem:[#allocation14_spill]] }
 0x4af   : > { %s1563_s11 = sld [smem:[#allocation12_spill]]  ;;  %s1564_s6 = sld [smem:[#allocation13_spill]] }
 0x4b0   : > { %s1565_s18 = smov %s1137_s19  ;;  %s1566_s19 = smov %s1141_s20 }
 0x4b1   : > { %s1567_s20 = smov %s1305_s16  ;;  %s1568_s21 = smov %s1149_s22 }
 0x4b2   : > { %s1570_s24 = smov %s1165_s26  ;;  %s1571_s25 = smov %s1169_s27 }
 0x4b3   : > { %s1569_s22 = smov %s1561_s15  ;;  %20 = sbr.rel (!%p18_p3) target bundleno = 11 (0xb), region = 99 }
 0x4b5   : > { %s1572_s26 = smov %s1563_s11  ;;  %s1573_s27 = smov %s1564_s6 }
 0x4ba   :  { %645 = vsyncpa [#allocation6], 1 }
 0x4bb   :  { %647 = vsyncpa [#allocation6 + $0x1], 1 }
 0x4bc   :  { %648 = vsyncpa [#allocation7], 1 }
 0x4bd   :  { %650 = vsyncpa [#allocation7 + $0x1], 1 }

</bundles_post_ra>
